<compile_context>
chip_gen: v7x
topology: tpu7x:2x2x1
jax: 0.10.0
libtpu: 0.0.40
codegen_flags: <defaults>
</compile_context>

<pallas_src>
import jax
import jax.numpy as jnp
from jax import lax
from jax.experimental import pallas as pl
from jax.experimental.pallas import tpu as pltpu

EPS = 1e-5  # torch.nn.BatchNorm1d default eps


# ----------------------------------------------------------------------------
# Helpers: tile picking and gen-gated VMEM-limit sizing.
# ----------------------------------------------------------------------------
def _batch_tile(b, pref=8):
    if b <= pref:
        return b
    if b % pref == 0:
        return pref
    return b


def _spatial_tile(hw, pref=128):
    """Largest 8-aligned spatial tile <= pref dividing hw, else the full hw."""
    if hw <= pref:
        return hw
    t = pref - (pref % 8)
    while t >= 8:
        if hw % t == 0:
            return t
        t -= 8
    return hw


def _vmem_cap_bytes():
    try:
        info = pltpu.get_tpu_info()
        return int(getattr(info, "vmem_capacity_bytes", 64 * 1024 * 1024))
    except Exception:  # pragma: no cover - conservative fallback
        return 64 * 1024 * 1024


def _vmem_limit(per_step_bytes):
    """Explicit scoped-VMEM limit: 2x the estimated per-step footprint,
    floored at 32 MiB; cap 96 MiB on 128-MiB chips (v5e/v6e), 48 MiB on v7x."""
    cap = 96 * 1024 * 1024 if _vmem_cap_bytes() >= 128 * 1024 * 1024 \
        else 48 * 1024 * 1024
    return int(min(max(2 * per_step_bytes, 32 * 1024 * 1024), cap))


# ----------------------------------------------------------------------------
# Backbone kernel: 1x1 conv (matmul) + bias + ReLU + global average pool,
# with the spatial axis tiled as a pooled-reduction grid dimension.
# TODO(synk): the PyTorch `backbone` is an arbitrary user nn.Module; a
# synthetic 1x1-conv + ReLU + global-avg-pool stands in for it here.  A real
# backbone should fold im2col into its first conv so the contraction
# K = C*kh*kw >= 128 and take channels-last input, eliminating the host-side
# NCHW->NHWC transpose in simsiam_forward.
# ----------------------------------------------------------------------------
def _make_backbone_kernel(inv_hw):
    def kernel(x_ref, wc_ref, bc_ref, f_ref, acc_ref):
        s = pl.program_id(2)

        @pl.when(s == 0)
        def _init():
            acc_ref[...] = jnp.zeros_like(acc_ref)

        _, bt, ht, c = x_ref.shape
        x = x_ref[0].reshape(bt * ht, c).astype(jnp.bfloat16)
        h = jnp.dot(x, wc_ref[...], preferred_element_type=jnp.float32)
        h = jnp.maximum(h + bc_ref[...], 0.0)                  # bias + ReLU (f32)
        # partial global-average-pool: one reshape + reduce per spatial tile
        acc_ref[...] += jnp.sum(h.reshape(bt, ht, h.shape[-1]), axis=1)

        @pl.when(s == pl.num_programs(2) - 1)
        def _finalize():
            f_ref[0] = (acc_ref[...] * inv_hw).astype(f_ref.dtype)

    return kernel


def backbone_forward(x_bsc, conv_w, conv_b):
    """x_bsc: (NB, B, HW, C) f32; conv_w: (C, F) bf16; conv_b: (1, F) f32."""
    nb, b, hw, c = x_bsc.shape
    f_dim = conv_w.shape[1]
    bt = _batch_tile(b)
    ht = _spatial_tile(hw)

    per_step = (2 * bt * ht * c * 4            # input blocks (double-buffered)
                + 2 * (c * f_dim * 2) + f_dim * 4   # weights + bias
                + 2 * bt * f_dim * 4           # output blocks
                + bt * ht * f_dim * 4          # conv intermediate (one tile)
                + bt * f_dim * 4)              # pooled accumulator
    return pl.pallas_call(
        _make_backbone_kernel(1.0 / float(hw)),
        out_shape=jax.ShapeDtypeStruct((nb, b, f_dim), jnp.float32),
        grid=(nb, b // bt, hw // ht),
        in_specs=[
            pl.BlockSpec((1, bt, ht, c), lambda br, i, s: (br, i, s, 0)),
            pl.BlockSpec((c, f_dim), lambda br, i, s: (0, 0)),
            pl.BlockSpec((1, f_dim), lambda br, i, s: (0, 0)),
        ],
        out_specs=pl.BlockSpec((1, bt, f_dim), lambda br, i, s: (br, i, 0)),
        scratch_shapes=[pltpu.VMEM((bt, f_dim), jnp.float32)],
        compiler_params=pltpu.CompilerParams(
            dimension_semantics=("parallel", "parallel", "arbitrary"),
            vmem_limit_bytes=_vmem_limit(per_step)),
    )(x_bsc, conv_w, conv_b)


# ----------------------------------------------------------------------------
# Fused heads kernel: projection MLP (3 layers) + prediction MLP (2 layers)
# in one pallas_call.  Grid = (branch,), one full branch batch per block so
# training-mode BatchNorm1d statistics stay per-branch.  Activations never
# leave VMEM between layers; only z and p are stored.
# ----------------------------------------------------------------------------
def _bn_train(h, gamma, beta):
    """Training-mode BatchNorm1d over the batch axis (biased var, f32)."""
    inv_n = 1.0 / h.shape[0]
    mean = jnp.sum(h, axis=0, keepdims=True) * inv_n
    ex2 = jnp.sum(h * h, axis=0, keepdims=True) * inv_n
    var = jnp.maximum(ex2 - mean * mean, 0.0)      # clamp one-pass variance
    return (h - mean) * lax.rsqrt(var + EPS) * gamma + beta


def _heads_kernel(f_ref,
                  pw1_ref, pg1_ref, pb1_ref,
                  pw2_ref, pg2_ref, pb2_ref,
                  pw3_ref, pg3_ref, pb3_ref,
                  qw1_ref, qg1_ref, qb1_ref,
                  qw2_ref, qbias_ref,
                  z_ref, p_ref):
    # --- projection MLP: (Linear + BN + ReLU) x2, Linear + BN ---------------
    x = f_ref[0].astype(jnp.bfloat16)
    h = jnp.dot(x, pw1_ref[...], preferred_element_type=jnp.float32)
    h = jnp.maximum(_bn_train(h, pg1_ref[...], pb1_ref[...]), 0.0)
    h = jnp.dot(h.astype(jnp.bfloat16), pw2_ref[...],
                preferred_element_type=jnp.float32)
    h = jnp.maximum(_bn_train(h, pg2_ref[...], pb2_ref[...]), 0.0)
    z = jnp.dot(h.astype(jnp.bfloat16), pw3_ref[...],
                preferred_element_type=jnp.float32)
    z = _bn_train(z, pg3_ref[...], pb3_ref[...])
    z_ref[0] = z.astype(z_ref.dtype)
    # --- prediction MLP: Linear + BN + ReLU, Linear(+bias) ------------------
    q = jnp.dot(z.astype(jnp.bfloat16), qw1_ref[...],
                preferred_element_type=jnp.float32)
    q = jnp.maximum(_bn_train(q, qg1_ref[...], qb1_ref[...]), 0.0)
    p = jnp.dot(q.astype(jnp.bfloat16), qw2_ref[...],
                preferred_element_type=jnp.float32)
    p_ref[0] = (p + qbias_ref[...]).astype(p_ref.dtype)


def heads_forward(f, params):
    """Projection MLP then prediction MLP, fused.  f: (NB, B, num_ftrs) f32."""
    nb, b, num_ftrs = f.shape
    proj_hidden = params["proj_w1"].shape[1]
    out_dim = params["proj_w3"].shape[1]
    pred_hidden = params["pred_w1"].shape[1]

    w_keys = ["proj_w1", "proj_g1", "proj_b1",
              "proj_w2", "proj_g2", "proj_b2",
              "proj_w3", "proj_g3", "proj_b3",
              "pred_w1", "pred_g1", "pred_b1",
              "pred_w2", "pred_bias2"]
    w_ins = [params[k] for k in w_keys]

    def _full_spec(arr):
        shape = tuple(arr.shape)
        return pl.BlockSpec(shape, lambda br: tuple(0 for _ in shape))

    in_specs = ([pl.BlockSpec((1, b, num_ftrs), lambda br: (br, 0, 0))]
                + [_full_spec(a) for a in w_ins])

    maxw = max(num_ftrs, proj_hidden, out_dim, pred_hidden)
    w_bytes = sum(int(a.size) * a.dtype.itemsize for a in w_ins)
    per_step = (2 * b * num_ftrs * 4           # f input blocks
                + 2 * w_bytes                  # weights + BN params
                + 2 * 2 * b * out_dim * 4      # z, p output blocks
                + 6 * b * maxw * 4)            # resident intermediates
    out_spec = pl.BlockSpec((1, b, out_dim), lambda br: (br, 0, 0))

    z, p = pl.pallas_call(
        _heads_kernel,
        out_shape=(jax.ShapeDtypeStruct((nb, b, out_dim), jnp.float32),
                   jax.ShapeDtypeStruct((nb, b, out_dim), jnp.float32)),
        grid=(nb,),
        in_specs=in_specs,
        out_specs=(out_spec, out_spec),
        compiler_params=pltpu.CompilerParams(
            dimension_semantics=("parallel",),
            vmem_limit_bytes=_vmem_limit(per_step)),
    )(f, *w_ins)
    return z, p


# ----------------------------------------------------------------------------
# Parameter init (deterministic, synthetic; mirrors the __init__ shapes).
# Linear weights stored as (in, out) in bf16; BN affine / biases in f32.
# ----------------------------------------------------------------------------
def init_params(key, in_channels, num_ftrs, proj_hidden_dim, pred_hidden_dim,
                out_dim):
    ks = jax.random.split(key, 8)

    def lin(k, fan_in, fan_out):
        bound = 1.0 / jnp.sqrt(jnp.float32(fan_in))
        w = jax.random.uniform(k, (fan_in, fan_out), jnp.float32, -bound, bound)
        return w.astype(jnp.bfloat16)          # bf16 MXU operands

    return {
        # synthetic backbone: 1x1 conv (C -> num_ftrs) + bias
        "conv_w": lin(ks[0], in_channels, num_ftrs),
        "conv_b": jax.random.uniform(ks[1], (1, num_ftrs), jnp.float32,
                                     -0.1, 0.1),
        # SimSiamProjectionHead(num_ftrs, proj_hidden_dim, out_dim)
        "proj_w1": lin(ks[2], num_ftrs, proj_hidden_dim),
        "proj_g1": jnp.ones((1, proj_hidden_dim), jnp.float32),
        "proj_b1": jnp.zeros((1, proj_hidden_dim), jnp.float32),
        "proj_w2": lin(ks[3], proj_hidden_dim, proj_hidden_dim),
        "proj_g2": jnp.ones((1, proj_hidden_dim), jnp.float32),
        "proj_b2": jnp.zeros((1, proj_hidden_dim), jnp.float32),
        "proj_w3": lin(ks[4], proj_hidden_dim, out_dim),
        "proj_g3": jnp.ones((1, out_dim), jnp.float32),
        "proj_b3": jnp.zeros((1, out_dim), jnp.float32),
        # SimSiamPredictionHead(out_dim, pred_hidden_dim, out_dim)
        "pred_w1": lin(ks[5], out_dim, pred_hidden_dim),
        "pred_g1": jnp.ones((1, pred_hidden_dim), jnp.float32),
        "pred_b1": jnp.zeros((1, pred_hidden_dim), jnp.float32),
        "pred_w2": lin(ks[6], pred_hidden_dim, out_dim),
        "pred_bias2": jax.random.uniform(
            ks[7], (1, out_dim), jnp.float32,
            -1.0 / jnp.sqrt(jnp.float32(pred_hidden_dim)),
            1.0 / jnp.sqrt(jnp.float32(pred_hidden_dim))),
    }


# ----------------------------------------------------------------------------
# SimSiam.forward: both branches run through the same kernels with a leading
# "parallel" branch grid axis (BN stays per-branch because each block holds
# exactly one branch's batch).
# ----------------------------------------------------------------------------
def simsiam_forward(params, x0, x1=None, return_features=False):
    xs = x0[None] if x1 is None else jnp.stack([x0, x1], axis=0)   # (NB,B,C,H,W)
    nb, b, c, h, w = xs.shape
    # TODO(synk): fold this NCHW->channels-last layout change into the real
    # backbone's first conv (im2col) to avoid the extra HBM pass.
    x_bsc = jnp.transpose(xs, (0, 1, 3, 4, 2)).reshape(nb, b, h * w, c)

    f = backbone_forward(x_bsc, params["conv_w"], params["conv_b"])  # (NB,B,F)
    z, p = heads_forward(f, params)                                  # (NB,B,D)

    def branch_out(i):
        out = (z[i], p[i])
        return (out, f[i]) if return_features else out

    if x1 is None:
        return branch_out(0)
    return branch_out(0), branch_out(1)


if __name__ == "__main__":
    # Small shapes consistent with the module: bsz x channels x W x H
    B, C, H, W = 2, 4, 16, 16
    num_ftrs, proj_hidden, pred_hidden, out_dim = 32, 32, 8, 32

    key = jax.random.PRNGKey(0)
    kp, k0, k1 = jax.random.split(key, 3)

    params = init_params(kp, C, num_ftrs, proj_hidden, pred_hidden, out_dim)
    x0 = jax.random.normal(k0, (B, C, H, W), jnp.float32)
    x1 = jax.random.normal(k1, (B, C, H, W), jnp.float32)

    ((z0, p0), f0), ((z1, p1), f1) = simsiam_forward(
        params, x0, x1, return_features=True)

    jax.block_until_ready((z0, p0, f0, z1, p1, f1))
    assert z0.shape == (B, out_dim) and p0.shape == (B, out_dim)
    assert z1.shape == (B, out_dim) and p1.shape == (B, out_dim)
    assert f0.shape == (B, num_ftrs) and f1.shape == (B, num_ftrs)
    print("KERNEL_OK")
</pallas_src>

<mosaic_0001>
module attributes {stable_mosaic.version = 11 : i64} {
  func.func @kernel(%arg0: i32, %arg1: i32, %arg2: i32, %arg3: memref<1x2x128x4xf32, #tpu.memory_space<vmem>>, %arg4: memref<4x32xbf16, #tpu.memory_space<vmem>>, %arg5: memref<1x32xf32, #tpu.memory_space<vmem>>, %arg6: memref<1x2x32xf32, #tpu.memory_space<vmem>>, %arg7: memref<2x32xf32, #tpu.memory_space<vmem>>) attributes {dimension_semantics = [#tpu.dimension_semantics<parallel>, #tpu.dimension_semantics<parallel>, #tpu.dimension_semantics<arbitrary>], iteration_bounds = array<i64: 2, 1, 2>, scalar_prefetch = 0 : i64, scratch_operands = 1 : i64, tpu.core_type = #tpu.core_type<tc>, window_params = [{transform_indices = @transform_0, window_bounds = array<i64: 1, 2, 128, 4>}, {pipeline_mode = #tpu.pipeline_mode<synchronous>, transform_indices = @transform_1, window_bounds = array<i64: 4, 32>}, {pipeline_mode = #tpu.pipeline_mode<synchronous>, transform_indices = @transform_2, window_bounds = array<i64: 1, 32>}, {transform_indices = @transform_3, window_bounds = array<i64: 1, 2, 32>}]} {
    %c0_i32 = arith.constant 0 : i32
    %0 = arith.cmpi eq, %arg2, %c0_i32 : i32
    %1 = arith.extui %0 : i1 to i32
    %c0_i32_0 = arith.constant 0 : i32
    %2 = arith.cmpi ne, %1, %c0_i32_0 : i32
    scf.if %2 {
      %cst_15 = arith.constant 0.000000e+00 : f32
      %22 = vector.broadcast %cst_15 : f32 to vector<2x32xf32>
      %c0_16 = arith.constant 0 : index
      %c0_17 = arith.constant 0 : index
      %23 = vector.load %arg7[%c0_16, %c0_17] : memref<2x32xf32, #tpu.memory_space<vmem>>, vector<2x32xf32>
      tpu.vector_store %arg7[%c0_16, %c0_17], %22 {strides = array<i32>} : memref<2x32xf32, #tpu.memory_space<vmem>>, vector<2x32xf32>,
    } else {
    }
    %c0 = arith.constant 0 : index
    %c0_1 = arith.constant 0 : index
    %c0_2 = arith.constant 0 : index
    %c0_3 = arith.constant 0 : index
    %3 = vector.load %arg3[%c0, %c0_1, %c0_2, %c0_3] : memref<1x2x128x4xf32, #tpu.memory_space<vmem>>, vector<1x2x128x4xf32>
    %4 = vector.shape_cast %3 : vector<1x2x128x4xf32> to vector<2x128x4xf32>
    %5 = vector.shape_cast %4 : vector<2x128x4xf32> to vector<256x4xf32>
    %6 = arith.truncf %5 : vector<256x4xf32> to vector<256x4xbf16>
    %c0_4 = arith.constant 0 : index
    %c0_5 = arith.constant 0 : index
    %7 = vector.load %arg4[%c0_4, %c0_5] : memref<4x32xbf16, #tpu.memory_space<vmem>>, vector<4x32xbf16>
    %cst = arith.constant dense<0.000000e+00> : vector<256x32xf32>
    %8 = tpu.matmul %6, %7, %cst {dimension_numbers = #tpu.dot_dimension_numbers<[1], [0], [0], [1], [0, 0, 1, 1], [], []>} : vector<256x4xbf16>, vector<4x32xbf16>, vector<256x32xf32> -> vector<256x32xf32>
    %c0_6 = arith.constant 0 : index
    %c0_7 = arith.constant 0 : index
    %9 = vector.load %arg5[%c0_6, %c0_7] : memref<1x32xf32, #tpu.memory_space<vmem>>, vector<1x32xf32>
    %10 = vector.broadcast %9 : vector<1x32xf32> to vector<256x32xf32>
    %11 = arith.addf %8, %10 : vector<256x32xf32>
    %cst_8 = arith.constant 0.000000e+00 : f32
    %12 = vector.broadcast %cst_8 : f32 to vector<256x32xf32>
    %13 = arith.maximumf %11, %12 : vector<256x32xf32>
    %c0_9 = arith.constant 0 : index
    %c0_10 = arith.constant 0 : index
    %14 = vector.load %arg7[%c0_9, %c0_10] : memref<2x32xf32, #tpu.memory_space<vmem>>, vector<2x32xf32>
    %15 = vector.shape_cast %13 : vector<256x32xf32> to vector<2x128x32xf32>
    %cst_11 = arith.constant dense<0.000000e+00> : vector<2x32xf32>
    %16 = vector.multi_reduction <add>, %15, %cst_11 [1] : vector<2x128x32xf32> to vector<2x32xf32>
    %17 = arith.addf %14, %16 : vector<2x32xf32>
    %c0_12 = arith.constant 0 : index
    %c0_13 = arith.constant 0 : index
    %18 = vector.load %arg7[%c0_12, %c0_13] : memref<2x32xf32, #tpu.memory_space<vmem>>, vector<2x32xf32>
    tpu.vector_store %arg7[%c0_12, %c0_13], %17 {strides = array<i32>} : memref<2x32xf32, #tpu.memory_space<vmem>>, vector<2x32xf32>,
    %c1_i32 = arith.constant 1 : i32
    %19 = arith.cmpi eq, %arg2, %c1_i32 : i32
    %20 = arith.extui %19 : i1 to i32
    %c0_i32_14 = arith.constant 0 : i32
    %21 = arith.cmpi ne, %20, %c0_i32_14 : i32
    scf.if %21 {
      %c0_15 = arith.constant 0 : index
      %c0_16 = arith.constant 0 : index
      %22 = vector.load %arg7[%c0_15, %c0_16] : memref<2x32xf32, #tpu.memory_space<vmem>>, vector<2x32xf32>
      %cst_17 = arith.constant 3.906250e-03 : f32
      %23 = vector.broadcast %cst_17 : f32 to vector<2x32xf32>
      %24 = arith.mulf %22, %23 : vector<2x32xf32>
      %c0_18 = arith.constant 0 : index
      %c0_19 = arith.constant 0 : index
      %c0_20 = arith.constant 0 : index
      %25 = vector.load %arg6[%c0_18, %c0_19, %c0_20] : memref<1x2x32xf32, #tpu.memory_space<vmem>>, vector<1x2x32xf32>
      %26 = vector.shape_cast %25 : vector<1x2x32xf32> to vector<2x32xf32>
      %27 = vector.shape_cast %24 : vector<2x32xf32> to vector<1x2x32xf32>
      tpu.vector_store %arg6[%c0_18, %c0_19, %c0_20], %27 {strides = array<i32>} : memref<1x2x32xf32, #tpu.memory_space<vmem>>, vector<1x2x32xf32>,
    } else {
    }
    return
  }
  func.func @transform_0(%arg0: i32, %arg1: i32, %arg2: i32) -> (i32, i32, i32, i32) {
    %c0_i32 = arith.constant 0 : i32
    %c0_i32_0 = arith.constant 0 : i32
    return %arg0, %arg1, %arg2, %c0_i32 : i32, i32, i32, i32
  }
  func.func @transform_1(%arg0: i32, %arg1: i32, %arg2: i32) -> (i32, i32) {
    %c0_i32 = arith.constant 0 : i32
    %c0_i32_0 = arith.constant 0 : i32
    %c0_i32_1 = arith.constant 0 : i32
    return %c0_i32, %c0_i32_0 : i32, i32
  }
  func.func @transform_2(%arg0: i32, %arg1: i32, %arg2: i32) -> (i32, i32) {
    %c0_i32 = arith.constant 0 : i32
    %c0_i32_0 = arith.constant 0 : i32
    %c0_i32_1 = arith.constant 0 : i32
    return %c0_i32, %c0_i32_0 : i32, i32
  }
  func.func @transform_3(%arg0: i32, %arg1: i32, %arg2: i32) -> (i32, i32, i32) {
    %c0_i32 = arith.constant 0 : i32
    %c0_i32_0 = arith.constant 0 : i32
    return %arg0, %arg1, %c0_i32 : i32, i32, i32
  }
}

</mosaic_0001>

<bundles_post_ra>
// kernel: tpu_custom_call.1
= control target key start
LH: loop header
LB: loop body
LE: loop exit
PB: predicated region body
PF: predicated region fallthrough
CT: control target
= control target key end

     0   :  { %8 = vsyncpa [#allocation5], 0  ;;  %s1534_s0 = inlined_call_operand.vmem [shape: f32[2,2,256,4], index: 0, kind: input, shape index: {}]   ;;  %s1535_s1 = inlined_call_operand.vmem [shape: bf16[4,32], index: 1, kind: input, shape index: {}]   ;;  %s1536_s2 = inlined_call_operand.vmem [shape: f32[1,32], index: 2, kind: input, shape index: {}]   ;;  %s1537_s3 = inlined_call_operand.hbm [shape: f32[2,2,32], index: 3, kind: output, shape index: {}]  }
   0x1   :  { %10 = vsyncpa [#allocation5 + $0x1], 0  ;;  %s1171_s12 = smov 0   ;;  %s1173_s13 = smov 0  }
   0x2   :  { %s1175_s14 = smov 0   ;;  %s1177_s15 = smov 0  }
   0x3   :  { %s1179_s16 = smov 0   ;;  %s1181_s17 = smov 0  }
   0x4   :  { %s1183_s18 = smov 0   ;;  %s1185_s19 = smov 0  }
   0x5   :  { %s1187_s20 = smov 0   ;;  %s1189_s21 = smov 0  }
   0x6 LB: > { %s860_s22 = sadd.s32 4294967295, %s1147_s21   ;;  %s861_s23 = sadd.s32 4294967294, %s1147_s21   ;;  %s1147_s21 = sphi %s1189_s21, %s16_s21   ;;  %s1143_s20 = sphi %s1187_s20, %s1549_s20   ;;  %s1139_s19 = sphi %s1185_s19, %s1548_s19   ;;  %s1135_s18 = sphi %s1183_s18, %s1547_s18   ;;  %s1131_s17 = sphi %s1181_s17, %s1546_s17   ;;  %s1127_s16 = sphi %s1179_s16, %s1545_s16   ;;  %s1123_s15 = sphi %s1177_s15, %s1544_s15   ;;  %s1119_s14 = sphi %s1175_s14, %s1543_s14   ;;  %s1115_s13 = sphi %s1173_s13, %s1542_s13   ;;  %s1111_s12 = sphi %s1171_s12, %s1541_s12  }
   0x7   : > { %s28_s24 = sadd.s32 1, %s1139_s19  ;;  %s35_s25 = sadd.s32 1, %s1143_s20 }
   0x8   : > { %p29_p0 = scmp.ge.s32.totalorder %s28_s24, 2  ;;  %s46_s26 = sadd.s32 1, %s1127_s16 }
   0x9   : > { %p53_p1 = scmp.ne.s32.totalorder %s1127_s16, %s1123_s15  ;;  %p54_p2 = scmp.eq.s32.totalorder %s1147_s21, 0 }
   0xa   : > { %s1551_s24 = smov (%p29_p0, %s28_s24), 0  ;;  %s1553_s25 = smov (!%p29_p0, %s35_s25), %s1143_s20 }
   0xb   : > { %s42_s27 = ssub.s32 %s1139_s19, %s1551_s24  ;;  %p1234_p3 = por %p54_p2, %p53_p1 }
   0xc   : > { %p37_p4 = scmp.ge.s32.totalorder %s1553_s25, 2  ;;  %s116_s29 = sadd.s32 1, %s1119_s14 }
   0xd   : > { %p126_p5 = scmp.ne.s32.totalorder %s1119_s14, %s1115_s13  ;;  %p127_p6 = scmp.eq.s32.totalorder %s860_s22, 3 }
   0xe   : > { %s1555_s25 = smov (%p37_p4, %s1553_s25), 0  ;;  %p132_p8 = scmp.ne.s32.totalorder %s1115_s13, %s1111_s12 }
   0xf   : > { %p1243_p7 = por %p127_p6, %p126_p5  ;;  %s39_s4 = ssub.s32 %s1143_s20, %s1555_s25 }
  0x10   : > { %p133_p9 = scmp.eq.s32.totalorder %s861_s23, 3  ;;  %s43_s5 = sor.u32 %s42_s27, %s39_s4 }
  0x11   : > { %p114_p10 = scmp.eq.s32.totalorder %s39_s4, 0  ;;  %p44_p11 = scmp.eq.s32.totalorder %s43_s5, 0 }
  0x12   : > { %p1251_p12 = por %p133_p9, %p132_p8  ;;  %p863_p13 = scmp.ge.s32.totalorder %s1147_s21, 4 }
  0x13   : > { %s1256_s7 = scalar_select %p114_p10, %s1119_s14, %s116_s29  }
  0x14   : > { %s1259_s8 = scalar_select %p44_p11, %s1127_s16, %s46_s26  }
  0x15   : > { %155 = sbr.rel (%p863_p13) target bundleno = 51 (0x33), region = 24 }
  0x1c   : > { %158 = sbr.rel (!%p1234_p3) target bundleno = 51 (0x33), region = 28  ;;  %s160_s9 = sand.u32 (%p1234_p3), 1, %s1127_s16  }
  0x1d   : > { %s865_s10 = sshll.u32 (%p1234_p3), %s1139_s19, 4  ;;  %s864_s11 = sshll.u32 (%p1234_p3), %s160_s9, 8 }
  0x1e   : > { %s866_s22 = sshll.u32 (%p1234_p3), %s1143_s20, 6  ;;  %s1275_s28 = scalar_lea.vmem (%p1234_p3), [#allocation3], %s864_s11 }
  0x1f   : > { %s168_s23 = sadd.s32 (%p1234_p3), %s866_s22, %s865_s10 }
  0x20   : > { %s867_s27 = sshll.u32 (%p1234_p3), %s168_s23, 3 }
  0x21   : > { %s1270_s26 = scalar_lea.vmem (%p1234_p3), %s1534_s0, %s867_s27 }
  0x22   : > { %v260_v0 = vld [vmem:[%s1270_s26] sm:$0xff] (%p1234_p3)  ;;  %v262_v1 = vld [vmem:[%s1270_s26 + $0x8] sm:$0xff] (%p1234_p3)  ;;  %v264_v2 = vld [vmem:[%s1270_s26 + $0x10] sm:$0xff] (%p1234_p3) }
  0x23   : > { %261 = vst [vmem:[%s1275_s28] sm:$0xff] %v260_v0  ;;  %263 = vst [vmem:[%s1275_s28 + $0x8] sm:$0xff] %v262_v1  ;;  %v266_v3 = vld [vmem:[%s1270_s26 + $0x18] sm:$0xff]  ;;  %v268_v4 = vld [vmem:[%s1270_s26 + $0x20] sm:$0xff] }
  0x24   : > { %265 = vst [vmem:[%s1275_s28 + $0x10] sm:$0xff] %v264_v2  ;;  %v270_v5 = vld [vmem:[%s1270_s26 + $0x28] sm:$0xff]  ;;  %267 = vst [vmem:[%s1275_s28 + $0x18] sm:$0xff] %v266_v3  ;;  %v272_v6 = vld [vmem:[%s1270_s26 + $0x30] sm:$0xff] }
  0x25   : > { %269 = vst [vmem:[%s1275_s28 + $0x20] sm:$0xff] %v268_v4  ;;  %271 = vst [vmem:[%s1275_s28 + $0x28] sm:$0xff] %v270_v5  ;;  %v274_v7 = vld [vmem:[%s1270_s26 + $0x38] sm:$0xff]  ;;  %v276_v8 = vld [vmem:[%s1270_s26 + $0x40] sm:$0xff] }
  0x26   : > { %273 = vst [vmem:[%s1275_s28 + $0x30] sm:$0xff] %v272_v6  ;;  %275 = vst [vmem:[%s1275_s28 + $0x38] sm:$0xff] %v274_v7  ;;  %v278_v9 = vld [vmem:[%s1270_s26 + $0x48] sm:$0xff]  ;;  %v280_v10 = vld [vmem:[%s1270_s26 + $0x50] sm:$0xff] }
  0x27   : > { %277 = vst [vmem:[%s1275_s28 + $0x40] sm:$0xff] %v276_v8  ;;  %v282_v11 = vld [vmem:[%s1270_s26 + $0x58] sm:$0xff]  ;;  %279 = vst [vmem:[%s1275_s28 + $0x48] sm:$0xff] %v278_v9  ;;  %v284_v12 = vld [vmem:[%s1270_s26 + $0x60] sm:$0xff] }
  0x28   : > { %281 = vst [vmem:[%s1275_s28 + $0x50] sm:$0xff] %v280_v10  ;;  %283 = vst [vmem:[%s1275_s28 + $0x58] sm:$0xff] %v282_v11  ;;  %v286_v13 = vld [vmem:[%s1270_s26 + $0x68] sm:$0xff]  ;;  %v288_v14 = vld [vmem:[%s1270_s26 + $0x70] sm:$0xff] }
  0x29   : > { %285 = vst [vmem:[%s1275_s28 + $0x60] sm:$0xff] %v284_v12  ;;  %287 = vst [vmem:[%s1275_s28 + $0x68] sm:$0xff] %v286_v13  ;;  %v290_v15 = vld [vmem:[%s1270_s26 + $0x78] sm:$0xff]  ;;  %v292_v16 = vld [vmem:[%s1270_s26 + $0x100] sm:$0xff] }
  0x2a   : > { %289 = vst [vmem:[%s1275_s28 + $0x70] sm:$0xff] %v288_v14  ;;  %v294_v17 = vld [vmem:[%s1270_s26 + $0x108] sm:$0xff]  ;;  %291 = vst [vmem:[%s1275_s28 + $0x78] sm:$0xff] %v290_v15  ;;  %v296_v18 = vld [vmem:[%s1270_s26 + $0x110] sm:$0xff] }
  0x2b   : > { %293 = vst [vmem:[%s1275_s28 + $0x80] sm:$0xff] %v292_v16  ;;  %295 = vst [vmem:[%s1275_s28 + $0x88] sm:$0xff] %v294_v17  ;;  %v298_v19 = vld [vmem:[%s1270_s26 + $0x118] sm:$0xff]  ;;  %v300_v20 = vld [vmem:[%s1270_s26 + $0x120] sm:$0xff] }
  0x2c   : > { %297 = vst [vmem:[%s1275_s28 + $0x90] sm:$0xff] %v296_v18  ;;  %299 = vst [vmem:[%s1275_s28 + $0x98] sm:$0xff] %v298_v19  ;;  %v302_v21 = vld [vmem:[%s1270_s26 + $0x128] sm:$0xff]  ;;  %v304_v22 = vld [vmem:[%s1270_s26 + $0x130] sm:$0xff] }
  0x2d   : > { %301 = vst [vmem:[%s1275_s28 + $0xa0] sm:$0xff] %v300_v20  ;;  %v306_v23 = vld [vmem:[%s1270_s26 + $0x138] sm:$0xff]  ;;  %303 = vst [vmem:[%s1275_s28 + $0xa8] sm:$0xff] %v302_v21  ;;  %v308_v24 = vld [vmem:[%s1270_s26 + $0x140] sm:$0xff] }
  0x2e   : > { %305 = vst [vmem:[%s1275_s28 + $0xb0] sm:$0xff] %v304_v22  ;;  %307 = vst [vmem:[%s1275_s28 + $0xb8] sm:$0xff] %v306_v23  ;;  %v310_v25 = vld [vmem:[%s1270_s26 + $0x148] sm:$0xff]  ;;  %v312_v26 = vld [vmem:[%s1270_s26 + $0x150] sm:$0xff] }
  0x2f   : > { %309 = vst [vmem:[%s1275_s28 + $0xc0] sm:$0xff] %v308_v24  ;;  %311 = vst [vmem:[%s1275_s28 + $0xc8] sm:$0xff] %v310_v25  ;;  %v314_v27 = vld [vmem:[%s1270_s26 + $0x158] sm:$0xff]  ;;  %v316_v28 = vld [vmem:[%s1270_s26 + $0x160] sm:$0xff] }
  0x30   : > { %313 = vst [vmem:[%s1275_s28 + $0xd0] sm:$0xff] %v312_v26  ;;  %v318_v29 = vld [vmem:[%s1270_s26 + $0x168] sm:$0xff]  ;;  %315 = vst [vmem:[%s1275_s28 + $0xd8] sm:$0xff] %v314_v27  ;;  %v320_v30 = vld [vmem:[%s1270_s26 + $0x170] sm:$0xff] }
  0x31   : > { %317 = vst [vmem:[%s1275_s28 + $0xe0] sm:$0xff] %v316_v28  ;;  %319 = vst [vmem:[%s1275_s28 + $0xe8] sm:$0xff] %v318_v29  ;;  %v322_v31 = vld [vmem:[%s1270_s26 + $0x178] sm:$0xff] }
  0x32   : > { %321 = vst [vmem:[%s1275_s28 + $0xf0] sm:$0xff] %v320_v30  ;;  %323 = vst [vmem:[%s1275_s28 + $0xf8] sm:$0xff] %v322_v31 }
  0x33 PF: > { %p868_p0 = scmp.ge.s32.totalorder %s1147_s21, 1  ;;  %p328_p1 = scmp.lt.s32.totalorder %s1147_s21, 5 }
  0x35   : > { %p329_p2 = pnand %p868_p0, %p328_p1 }
  0x36   : > { %s335_s5 = sand.u32 (!%p329_p2), 1, %s1123_s15   ;;  %s355_s9 = sand.u32 (!%p329_p2), 1, %s1115_s13  }
  0x37   : > { %332 = sbr.rel (%p329_p2) target bundleno = 375 (0x177), region = 66  ;;  %s869_s10 = sshll.u32 (!%p329_p2), %s335_s5, 8 }
  0x38   : > { %s1344_s11 = sshll.u32 (!%p329_p2), %s355_s9, 1  ;;  %s1346_s22 = scalar_lea.vmem (!%p329_p2), [#allocation3], %s869_s10 }
  0x39   : > { %s357_s23 = scalar_lea.vmem (!%p329_p2), [#allocation4], %s1344_s11  ;;  %p871_p3 = scmp.ne.s32.totalorder (!%p329_p2), %s1131_s17, 0 }
  0x3e   : > { %364 = sbr.rel (%p871_p3) target bundleno = 69 (0x45), region = 74  ;;  %vm365_vm0 = vcmask (!%p871_p3), 254976   ;;  %v1149_v32 = vmov (!%p871_p3), 0.0  }
  0x3f   : > { %366 = vst.msk [vmem:[#allocation2] sm:$0x3] (!%p871_p3), %vm365_vm0, %v1149_v32 }
  0x45 PF: > { %v415_v33 = vld [vmem:[%s1535_s1] sm:$0x3]  ;;  %vm472_vm1 = vcmask 1041408   ;;  %v367_v34 = vld [vmem:[%s1346_s22] sm:$0xff]  ;;  %v368_v35 = vld [vmem:[%s1346_s22 + $0x8] sm:$0xff]  ;;  %vm423_vm2 = vcmask 31744  }
  0x46   : > { %947 = vmatprep.subr.msk.bf16.mxu0 %vm472_vm1, %v415_v33  ;;  %948 = vmatprep.subr.msk.bf16.mxu1 %vm472_vm1, %v415_v33  ;;  %v474_v36 = vsel %vm472_vm1, %v415_v33, 0  ;;  %v399_v37 = vpack.c.bf16 %v368_v35, %v367_v34  ;;  %v383_v38 = vld [vmem:[%s1346_s22 + $0x80] sm:$0xff]  ;;  %v384_v39 = vld [vmem:[%s1346_s22 + $0x88] sm:$0xff]  ;;  %v369_v40 = vld [vmem:[%s1346_s22 + $0x10] sm:$0xff]  ;;  %vm670_vm3 = vcmask 261120   ;;  %vm747_vm4 = vcmask 1041409  }
  0x47   : > { %912 = vmatpush3.bf16.msra.mxu0 %v474_v36  ;;  %946 = vmatpush3.bf16.msra.mxu1 %v474_v36  ;;  %v407_v41 = vpack.c.bf16 %v384_v39, %v383_v38  ;;  %v370_v42 = vld [vmem:[%s1346_s22 + $0x18] sm:$0xff]  ;;  %v385_v43 = vld [vmem:[%s1346_s22 + $0x90] sm:$0xff]  ;;  %v371_v47 = vld [vmem:[%s1346_s22 + $0x20] sm:$0xff]  ;;  %vm751_vm5 = vcmask 254976   ;;  %p889_p4 = scmp.ne.s32.totalorder %s1131_s17, 1 }
  0x48   : > { %v386_v44 = vld [vmem:[%s1346_s22 + $0x98] sm:$0xff]  ;;  %913 = vmatprep.mubr.msk.bf16.mxu0 %vm423_vm2, %v399_v37  ;;  %v400_v45 = vpack.c.bf16 %v370_v42, %v369_v40  ;;  %v372_v48 = vld [vmem:[%s1346_s22 + $0x28] sm:$0xff]  ;;  %v387_v49 = vld [vmem:[%s1346_s22 + $0xa0] sm:$0xff] }
  0x49   : > { %v408_v46 = vpack.c.bf16 %v386_v44, %v385_v43  ;;  %929 = vmatprep.mubr.msk.bf16.mxu1 %vm423_vm2, %v407_v41  ;;  %v401_v50 = vpack.c.bf16 %v372_v48, %v371_v47  ;;  %v388_v51 = vld [vmem:[%s1346_s22 + $0xa8] sm:$0xff]  ;;  %v373_v53 = vld [vmem:[%s1346_s22 + $0x30] sm:$0xff]  ;;  %v374_v54 = vld [vmem:[%s1346_s22 + $0x38] sm:$0xff] }
  0x4a   : > { %914 = vmatmul.mubr.msk.bf16.vlgmr.msra.gmra.mrb[0].mxu0 %vm423_vm2, %v400_v45  ;;  %v409_v52 = vpack.c.bf16 %v388_v51, %v387_v49  ;;  %v389_v55 = vld [vmem:[%s1346_s22 + $0xb0] sm:$0xff]  ;;  %v390_v56 = vld [vmem:[%s1346_s22 + $0xb8] sm:$0xff]  ;;  %v375_v57 = vld [vmem:[%s1346_s22 + $0x40] sm:$0xff]  ;;  %v402_v61 = vpack.c.bf16 %v374_v54, %v373_v53 }
  0x4b   : > { %930 = vmatmul.mubr.msk.bf16.vlgmr.msra.gmra.mrb[0].mxu1 %vm423_vm2, %v408_v46  ;;  %917 = vmatprep.mubr.msk.bf16.mxu0 %vm423_vm2, %v401_v50  ;;  %v376_v58 = vld [vmem:[%s1346_s22 + $0x48] sm:$0xff]  ;;  %v391_v59 = vld [vmem:[%s1346_s22 + $0xc0] sm:$0xff]  ;;  %v410_v62 = vpack.c.bf16 %v390_v56, %v389_v55  ;;  %v377_v1 = vld [vmem:[%s1346_s22 + $0x50] sm:$0xff] }
  0x4c   : > { %933 = vmatprep.mubr.msk.bf16.mxu1 %vm423_vm2, %v409_v52  ;;  %v392_v60 = vld [vmem:[%s1346_s22 + $0xc8] sm:$0xff]  ;;  %v403_v63 = vpack.c.bf16 %v376_v58, %v375_v57  ;;  %v378_v2 = vld [vmem:[%s1346_s22 + $0x58] sm:$0xff]  ;;  %v393_v3 = vld [vmem:[%s1346_s22 + $0xd0] sm:$0xff] }
  0x4d   : > { %v411_v0 = vpack.c.bf16 %v392_v60, %v391_v59  ;;  %v394_v4 = vld [vmem:[%s1346_s22 + $0xd8] sm:$0xff]  ;;  %v379_v5 = vld [vmem:[%s1346_s22 + $0x60] sm:$0xff]  ;;  %v380_v6 = vld [vmem:[%s1346_s22 + $0x68] sm:$0xff]  ;;  %v404_v9 = vpack.c.bf16 %v378_v2, %v377_v1 }
  0x4e   : > { %v395_v7 = vld [vmem:[%s1346_s22 + $0xe0] sm:$0xff]  ;;  %v396_v8 = vld [vmem:[%s1346_s22 + $0xe8] sm:$0xff]  ;;  %v412_v10 = vpack.c.bf16 %v394_v4, %v393_v3  ;;  %v405_v11 = vpack.c.bf16 %v380_v6, %v379_v5  ;;  %v381_v13 = vld [vmem:[%s1346_s22 + $0x70] sm:$0xff] }
  0x4f   : > { %v413_v12 = vpack.c.bf16 %v396_v8, %v395_v7  ;;  %v382_v14 = vld [vmem:[%s1346_s22 + $0x78] sm:$0xff]  ;;  %v397_v15 = vld [vmem:[%s1346_s22 + $0xf0] sm:$0xff] }
  0x50   : > { %v398_v16 = vld [vmem:[%s1346_s22 + $0xf8] sm:$0xff]  ;;  %v406_v17 = vpack.c.bf16 %v382_v14, %v381_v13 }
  0x51   : > { %v414_v18 = vpack.c.bf16 %v398_v16, %v397_v15  ;;  %v1404_v19 = vld [vmem:[%s1536_s2] ss:$0 sm:$0xff] }
  0x52   : > { %918 = vmatmul.mubr.msk.bf16.gmra.mrb[4].mxu0 %vm423_vm2, %v402_v61 }
  0x53   : > { %934 = vmatmul.mubr.msk.bf16.gmra.mrb[4].mxu1 %vm423_vm2, %v410_v62  ;;  %921 = vmatprep.mubr.msk.bf16.mxu0 %vm423_vm2, %v403_v63 }
  0x54   : > { %937 = vmatprep.mubr.msk.bf16.mxu1 %vm423_vm2, %v411_v0 }
  0x5a   : > { %922 = vmatmul.mubr.msk.bf16.gmra.mrb[8].mxu0 %vm423_vm2, %v404_v9 }
  0x5b   : > { %938 = vmatmul.mubr.msk.bf16.gmra.mrb[8].mxu1 %vm423_vm2, %v412_v10  ;;  %925 = vmatprep.mubr.msk.bf16.mxu0 %vm423_vm2, %v405_v11 }
  0x5c   : > { %941 = vmatprep.mubr.msk.bf16.mxu1 %vm423_vm2, %v413_v12 }
  0x62   : > { %926 = vmatmul.mubr.msk.bf16.gmra.mrb[12].mxu0 %vm423_vm2, %v406_v17 }
  0x63   : > { %942 = vmatmul.mubr.msk.bf16.gmra.mrb[12].mxu1 %vm423_vm2, %v414_v18 }
 0x11d   : > { %v915_v20 = vpop.f32.mrb[0].mxu0 }
 0x11e   : > { %v931_v21 = vpop.f32.mrb[0].mxu1  ;;  %v510_v22 = vpop.f32.mrb[1].mxu0  ;;  %v519_v24 = vadd.f32 %v915_v20, %v1404_v19 }
 0x11f   : > { %v574_v23 = vpop.f32.mrb[1].mxu1  ;;  %v583_v25 = vadd.f32 %v931_v21, %v1404_v19  ;;  %v511_v26 = vadd.f32 %v1404_v19, %v510_v22  ;;  %v916_v28 = vpop.f32.mrb[2].mxu0 }
 0x120   : > { %v575_v27 = vadd.f32 %v1404_v19, %v574_v23  ;;  %v932_v29 = vpop.f32.mrb[2].mxu1  ;;  %v522_v30 = vadd.f32 %v916_v28, %v1404_v19  ;;  %v513_v32 = vpop.f32.mrb[3].mxu0  ;;  %v639_v38 = vmax.f32 %v519_v24, 0.0 }
 0x121   : > { %v586_v31 = vadd.f32 %v932_v29, %v1404_v19  ;;  %v577_v33 = vpop.f32.mrb[3].mxu1  ;;  %v637_v34 = vmax.f32 %v511_v26, 0.0  ;;  %v514_v36 = vadd.f32 %v1404_v19, %v513_v32  ;;  %v655_v39 = vmax.f32 %v583_v25, 0.0 }
 0x122   : > { %v653_v35 = vmax.f32 %v575_v27, 0.0  ;;  %v578_v37 = vadd.f32 %v1404_v19, %v577_v33  ;;  %v640_v42 = vmax.f32 %v522_v30, 0.0  ;;  %v674_v54 = vsel %vm670_vm3, %v639_v38, 0.0 }
 0x123   : > { %v638_v40 = vmax.f32 %v514_v36, 0.0  ;;  %v656_v43 = vmax.f32 %v586_v31, 0.0  ;;  %v671_v44 = vsel %vm670_vm3, %v637_v34, 0.0  ;;  %v711_v55 = vsel %vm670_vm3, %v655_v39, 0.0 }
 0x124   : > { %v654_v41 = vmax.f32 %v578_v37, 0.0  ;;  %v708_v45 = vsel %vm670_vm3, %v653_v35, 0.0  ;;  %v676_v60 = vsel %vm670_vm3, %v640_v42, 0.0 }
 0x125   : > { %v672_v46 = vsel %vm670_vm3, %v638_v40, 0.0  ;;  %v919_v48 = vpop.f32.mrb[4].mxu0  ;;  %v713_v61 = vsel %vm670_vm3, %v656_v43, 0.0 }
 0x126   : > { %v709_v47 = vsel %vm670_vm3, %v654_v41, 0.0  ;;  %v935_v49 = vpop.f32.mrb[4].mxu1  ;;  %v673_v50 = vadd.f32 %v672_v46, %v671_v44  ;;  %v526_v52 = vpop.f32.mrb[5].mxu0  ;;  %v535_v2 = vadd.f32 %v919_v48, %v1404_v19 }
 0x127   : > { %v710_v51 = vadd.f32 %v709_v47, %v708_v45  ;;  %v590_v53 = vpop.f32.mrb[5].mxu1  ;;  %v527_v56 = vadd.f32 %v1404_v19, %v526_v52  ;;  %v920_v58 = vpop.f32.mrb[6].mxu0  ;;  %v599_v3 = vadd.f32 %v935_v49, %v1404_v19 }
 0x128   : > { %v591_v57 = vadd.f32 %v1404_v19, %v590_v53  ;;  %v936_v59 = vpop.f32.mrb[6].mxu1  ;;  %v675_v62 = vadd.f32 %v674_v54, %v673_v50  ;;  %v529_v0 = vpop.f32.mrb[7].mxu0  ;;  %v538_v8 = vadd.f32 %v920_v58, %v1404_v19  ;;  %v643_v16 = vmax.f32 %v535_v2, 0.0 }
 0x129   : > { %v712_v63 = vadd.f32 %v711_v55, %v710_v51  ;;  %v593_v1 = vpop.f32.mrb[7].mxu1  ;;  %v641_v4 = vmax.f32 %v527_v56, 0.0  ;;  %v602_v9 = vadd.f32 %v936_v59, %v1404_v19  ;;  %v530_v14 = vadd.f32 %v1404_v19, %v529_v0 }
 0x12a   : > { %v657_v5 = vmax.f32 %v591_v57, 0.0  ;;  %v677_v6 = vadd.f32 %v676_v60, %v675_v62  ;;  %v594_v15 = vadd.f32 %v1404_v19, %v593_v1  ;;  %v659_v17 = vmax.f32 %v599_v3, 0.0 }
 0x12b   : > { %v714_v7 = vadd.f32 %v713_v61, %v712_v63  ;;  %v678_v10 = vsel %vm670_vm3, %v641_v4, 0.0  ;;  %v644_v21 = vmax.f32 %v538_v8, 0.0  ;;  %v660_v22 = vmax.f32 %v602_v9, 0.0 }
 0x12c   : > { %v715_v11 = vsel %vm670_vm3, %v657_v5, 0.0  ;;  %v679_v12 = vadd.f32 %v678_v10, %v677_v6  ;;  %v642_v23 = vmax.f32 %v530_v14, 0.0  ;;  %v658_v24 = vmax.f32 %v594_v15, 0.0 }
 0x12d   : > { %v716_v13 = vadd.f32 %v715_v11, %v714_v7  ;;  %v923_v18 = vpop.f32.mrb[8].mxu0  ;;  %v682_v41 = vsel %vm670_vm3, %v643_v16, 0.0  ;;  %v719_v42 = vsel %vm670_vm3, %v659_v17, 0.0  ;;  %v684_v43 = vsel %vm670_vm3, %v644_v21, 0.0 }
 0x12e   : > { %v939_v20 = vpop.f32.mrb[8].mxu1  ;;  %v542_v25 = vpop.f32.mrb[9].mxu0  ;;  %v680_v31 = vsel %vm670_vm3, %v642_v23, 0.0  ;;  %v717_v32 = vsel %vm670_vm3, %v658_v24, 0.0  ;;  %v551_v33 = vadd.f32 %v923_v18, %v1404_v19  ;;  %v721_v44 = vsel %vm670_vm3, %v660_v22, 0.0 }
 0x12f   : > { %v606_v26 = vpop.f32.mrb[9].mxu1  ;;  %v543_v27 = vadd.f32 %v1404_v19, %v542_v25  ;;  %v924_v29 = vpop.f32.mrb[10].mxu0  ;;  %v615_v34 = vadd.f32 %v939_v20, %v1404_v19  ;;  %v681_v37 = vadd.f32 %v680_v31, %v679_v12  ;;  %v718_v38 = vadd.f32 %v717_v32, %v716_v13 }
 0x130   : > { %v607_v28 = vadd.f32 %v1404_v19, %v606_v26  ;;  %v940_v30 = vpop.f32.mrb[10].mxu1  ;;  %v545_v35 = vpop.f32.mrb[11].mxu0  ;;  %v554_v47 = vadd.f32 %v924_v29, %v1404_v19  ;;  %v647_v53 = vmax.f32 %v551_v33, 0.0 }
 0x131   : > { %v609_v36 = vpop.f32.mrb[11].mxu1  ;;  %v645_v39 = vmax.f32 %v543_v27, 0.0  ;;  %v683_v45 = vadd.f32 %v682_v41, %v681_v37  ;;  %v720_v46 = vadd.f32 %v719_v42, %v718_v38  ;;  %v618_v48 = vadd.f32 %v940_v30, %v1404_v19 }
 0x132   : > { %v661_v40 = vmax.f32 %v607_v28, 0.0  ;;  %v546_v51 = vadd.f32 %v1404_v19, %v545_v35  ;;  %v610_v52 = vadd.f32 %v1404_v19, %v609_v36  ;;  %v663_v54 = vmax.f32 %v615_v34, 0.0 }
 0x133   : > { %v686_v49 = vsel %vm670_vm3, %v645_v39, 0.0  ;;  %v685_v55 = vadd.f32 %v684_v43, %v683_v45  ;;  %v722_v56 = vadd.f32 %v721_v44, %v720_v46  ;;  %v648_v1 = vmax.f32 %v554_v47, 0.0 }
 0x134   : > { %v723_v50 = vsel %vm670_vm3, %v661_v40, 0.0  ;;  %v646_v59 = vmax.f32 %v546_v51, 0.0  ;;  %v662_v60 = vmax.f32 %v610_v52, 0.0  ;;  %v664_v2 = vmax.f32 %v618_v48, 0.0 }
 0x135   : > { %v927_v57 = vpop.f32.mrb[12].mxu0  ;;  %v687_v63 = vadd.f32 %v686_v49, %v685_v55  ;;  %v724_v0 = vadd.f32 %v723_v50, %v722_v56  ;;  %v690_v11 = vsel %vm670_vm3, %v647_v53, 0.0  ;;  %v727_v12 = vsel %vm670_vm3, %v663_v54, 0.0 }
 0x136   : > { %v943_v58 = vpop.f32.mrb[12].mxu1  ;;  %v558_v61 = vpop.f32.mrb[13].mxu0  ;;  %v688_v5 = vsel %vm670_vm3, %v646_v59, 0.0  ;;  %v725_v6 = vsel %vm670_vm3, %v662_v60, 0.0  ;;  %v567_v15 = vadd.f32 %v927_v57, %v1404_v19  ;;  %v692_v20 = vsel %vm670_vm3, %v648_v1, 0.0 }
 0x137   : > { %v622_v62 = vpop.f32.mrb[13].mxu1  ;;  %v928_v3 = vpop.f32.mrb[14].mxu0  ;;  %v559_v7 = vadd.f32 %v1404_v19, %v558_v61  ;;  %v689_v13 = vadd.f32 %v688_v5, %v687_v63  ;;  %v726_v14 = vadd.f32 %v725_v6, %v724_v0  ;;  %v631_v16 = vadd.f32 %v943_v58, %v1404_v19 }
 0x138   : > { %v944_v4 = vpop.f32.mrb[14].mxu1  ;;  %v623_v8 = vadd.f32 %v1404_v19, %v622_v62  ;;  %v561_v9 = vpop.f32.mrb[15].mxu0  ;;  %v729_v21 = vsel %vm670_vm3, %v664_v2, 0.0  ;;  %v570_v26 = vadd.f32 %v928_v3, %v1404_v19  ;;  %v651_v32 = vmax.f32 %v567_v15, 0.0  ;;  %v669_v62 = vld [vmem:[#allocation2] sm:$0x3] }
 0x139   : > { %v625_v10 = vpop.f32.mrb[15].mxu1  ;;  %v649_v17 = vmax.f32 %v559_v7, 0.0  ;;  %v691_v22 = vadd.f32 %v690_v11, %v689_v13  ;;  %v728_v23 = vadd.f32 %v727_v12, %v726_v14  ;;  %v634_v27 = vadd.f32 %v944_v4, %v1404_v19 }
 0x13a   : > { %v665_v18 = vmax.f32 %v623_v8, 0.0  ;;  %v562_v30 = vadd.f32 %v1404_v19, %v561_v9  ;;  %v626_v31 = vadd.f32 %v1404_v19, %v625_v10  ;;  %v667_v33 = vmax.f32 %v631_v16, 0.0 }
 0x13b   : > { %v694_v24 = vsel %vm670_vm3, %v649_v17, 0.0  ;;  %v693_v28 = vadd.f32 %v692_v20, %v691_v22  ;;  %v730_v29 = vadd.f32 %v729_v21, %v728_v23  ;;  %v652_v38 = vmax.f32 %v570_v26, 0.0 }
 0x13c   : > { %v731_v25 = vsel %vm670_vm3, %v665_v18, 0.0  ;;  %v650_v36 = vmax.f32 %v562_v30, 0.0  ;;  %v666_v37 = vmax.f32 %v626_v31, 0.0  ;;  %v668_v39 = vmax.f32 %v634_v27, 0.0 }
 0x13d   : > { %v695_v34 = vadd.f32 %v694_v24, %v693_v28  ;;  %v732_v35 = vadd.f32 %v731_v25, %v730_v29  ;;  %v698_v44 = vsel %vm670_vm3, %v651_v32, 0.0  ;;  %v735_v45 = vsel %vm670_vm3, %v667_v33, 0.0 }
 0x13e   : > { %v696_v40 = vsel %vm670_vm3, %v650_v36, 0.0  ;;  %v733_v41 = vsel %vm670_vm3, %v666_v37, 0.0  ;;  %v700_v47 = vsel %vm670_vm3, %v652_v38, 0.0  ;;  %v737_v48 = vsel %vm670_vm3, %v668_v39, 0.0 }
 0x13f   : > { %v697_v42 = vadd.f32 %v696_v40, %v695_v34  ;;  %v734_v43 = vadd.f32 %v733_v41, %v732_v35 }
 0x141   : > { %v699_v46 = vadd.f32 %v698_v44, %v697_v42  ;;  %v736_v19 = vadd.f32 %v735_v45, %v734_v43 }
 0x143   : > { %v701_v49 = vadd.f32 %v700_v47, %v699_v46  ;;  %v738_v50 = vadd.f32 %v737_v48, %v736_v19 }
 0x145   : > { %v702_v51 = vrot.slane %v701_v49, 4  ;;  %v739_v52 = vrot.slane %v738_v50, 4 }
 0x147   : > { %v703_v53 = vadd.f32 %v702_v51, %v701_v49  ;;  %v740_v54 = vadd.f32 %v739_v52, %v738_v50 }
 0x149   : > { %v704_v55 = vrot.slane %v703_v53, 2  ;;  %v741_v56 = vrot.slane %v740_v54, 2 }
 0x14b   : > { %v705_v57 = vadd.f32 %v704_v55, %v703_v53  ;;  %v742_v58 = vadd.f32 %v741_v56, %v740_v54 }
 0x14d   : > { %v706_v59 = vrot.slane %v705_v57, 1  ;;  %v743_v60 = vrot.slane %v742_v58, 1 }
 0x14e   : > { %756 = sbr.rel (%p889_p4) target bundleno = 351 (0x15f), region = 78 }
 0x14f   : > { %v707_v61 = vadd.f32 %v706_v59, %v705_v57  ;;  %v744_v63 = vadd.f32 %v743_v60, %v742_v58 }
 0x151   : > { %v748_v0 = vsel %vm747_vm4, %v744_v63, %v707_v61 }
 0x152   : > { %v750_v1 = vadd.f32 %v748_v0, %v669_v62 }
 0x154   : > { %752 = vst.msk [vmem:[#allocation2] sm:$0x3] %vm751_vm5, %v750_v1 }
 0x15b   : > { %v757_v2 = vld [vmem:[#allocation2] sm:$0x3] }
 0x15c   : > { %v758_v3 = vmul.f32 0.00390625, %v757_v2 }
 0x15e   : > { %759 = vst.msk [vmem:[%s357_s23] sm:$0x3] %vm751_vm5, %v758_v3 }
 0x15f PF: > { %s891_s26 = sshll.u32 %s1135_s18, 5  ;;  %s775_s22 = sshll.u32 %s357_s23, 4  ;;  %s776_s22 = int_to_ptr.vmem [resolvable:$true] %s775_s22 }
 0x160   : > { %s1477_s10 = scalar_lea.hbm %s1537_s3, %s891_s26  ;;  %s761_s17 = scalar_lea.sflag [#allocation5], %s355_s9 }
 0x161   : > { %s1037_s27 = scalar_lea.vmem %s776_s22, 32  ;;  %s1150_s4 = smov [#allocation4]  }
 0x162   : > { %p1038_p5 = scmp.ne.s32.totalorder %s776_s22, %s1037_s27  ;;  %s1041_s15 = sshll.u32 %s1150_s4, 4  ;;  %s1042_s15 = int_to_ptr.vmem [resolvable:$false] %s1041_s15 }
 0x163   : > { %s1043_s29 = scalar_lea.vmem %s1042_s15, 64  ;;  %p1044_p9 = scmp.lt.s32.totalorder %s776_s22, %s1042_s15 }
 0x164   : > { %p1039_p6 = pnand %p1038_p5, %p1243_p7  ;;  %p1045_p10 = scmp.lt.s32.totalorder %s1043_s29, %s1037_s27 }
 0x166   : > { %p1040_p8 = pneg %p1039_p6  ;;  %p1046_p11 = por %p1045_p10, %p1044_p9 }
 0x168   : > { %p1047_p13 = pnand %p1046_p11, %p1040_p8 }
 0x16a   : > { %1050 = shalt.err (!%p1047_p13)
}
 0x16b   : > { %s1051_s18 = scalar_lea.hbm %s1477_s10, 32  ;;  %s1055_s23 = scalar_lea.hbm %s1537_s3, 64 }
 0x16c   : > { %p1052_p0 = scmp.ne.s32.totalorder %s1477_s10, %s1051_s18  ;;  %p1056_p3 = scmp.lt.u32.totalorder %s1477_s10, %s1537_s3 }
 0x16d   : > { %p1057_p4 = scmp.lt.u32.totalorder %s1055_s23, %s1051_s18  ;;  %p1059_p6 = scmp.lt.u32.totalorder %s1051_s18, %s1477_s10 }
 0x16e   : > { %p1053_p1 = pnand %p1052_p0, %p1243_p7 }
 0x16f   : > { %p1058_p5 = por %p1057_p4, %p1056_p3 }
 0x170   : > { %p1054_p2 = pneg %p1053_p1 }
 0x171   : > { %p1060_p8 = por %p1059_p6, %p1058_p5 }
 0x173   : > { %p1061_p9 = pnand %p1060_p8, %p1054_p2 }
 0x175   : > { %1064 = shalt.err (!%p1061_p9)
}
 0x176   : > { %949 = dma.vmem_to_hbm [thread:$0]  (%p1243_p7), %s776_s22, 32, %s1477_s10, %s761_s17  }
 0x177 PF: > { %p955_p10 = scmp.ge.s32.totalorder %s1147_s21, 2  ;;  %s787_s5 = sand.u32 1, %s1111_s12  }
 0x178   : > { %s788_s27 = scalar_lea.sflag [#allocation5], %s787_s5 }
 0x179   : > { %p952_p11 = pnand %p955_p10, %p1251_p12 }
 0x17b   : > { %1106 = dma.done.wait (!%p952_p11), %s788_s27, 32  }
 0x17c   : > { %1108 = vsyncadd (!%p952_p11), %s788_s27, 4294967264  ;;  %s16_s21 = sadd.s32 1, %s1147_s21   ;;  %s1541_s12 = smov %s1115_s13 }
 0x17d   : > { %p13_p13 = scmp.ge.s32.totalorder %s16_s21, 6   ;;  %s1542_s13 = smov %s1119_s14 }
 0x17e   : > { %s1543_s14 = smov %s1256_s7  ;;  %s1544_s15 = smov %s1127_s16 }
 0x17f   : > { %s1545_s16 = smov %s1259_s8  ;;  %s1546_s17 = smov %s1139_s19 }
 0x180   : > { %s1547_s18 = smov %s1143_s20  ;;  %s1548_s19 = smov %s1551_s24 }
 0x181   : > { %s1549_s20 = smov %s1555_s25  ;;  %15 = sbr.rel (!%p13_p13) target bundleno = 6 (0x6), region = 118 }
 0x188   :  { %793 = vsyncpa [#allocation5], 1 }
 0x189   :  { %795 = vsyncpa [#allocation5 + $0x1], 1 }

</bundles_post_ra>
